<compile_context>
chip_gen: v5e
topology: v5e:2x2
jax: 0.10.0
libtpu: 0.0.40
codegen_flags: <defaults>
</compile_context>

<pallas_src>
import functools

import numpy as np
import jax
import jax.numpy as jnp
from jax.experimental import pallas as pl
from jax.experimental.pallas import tpu as pltpu


def _is_pow2(n):
    return n > 0 and (n & (n - 1)) == 0


@functools.lru_cache(maxsize=None)
def _pool_matrix(H, W, pool):
    """Block-diagonal constant [S 0; 0 G] of shape (2*H*W, 2*pool*pool).

    S averages each (kh, kw) window of the lane-flattened (C, H*W) input.
    G selects, for each window, the lane where the in-kernel roll/max
    reduction leaves that window's maximum.
    """
    kh, kw = H // pool, W // pool
    P = pool * pool
    HW = H * W
    M = np.zeros((2 * HW, 2 * P), np.float32)
    inv = 1.0 / (kh * kw)
    for h in range(H):
        for w in range(W):
            p = (h // kh) * pool + (w // kw)
            M[h * W + w, p] = inv
    for p in range(P):
        oh, ow = p // pool, p % pool
        src = (oh * kh + kh - 1) * W + ow * kw + (kw - 1)
        M[HW + src, P + p] = 1.0
    return M


def channel_attention_kernel(x_ref, m_ref, w_ref, o_ref, *, pool, H, W):
    C = x_ref.shape[0]
    kh, kw = H // pool, W // pool
    P = pool * pool

    xf = x_ref[...]                                        # (C, H*W), lane-dense

    # ---- max pool: log-step roll/max reduce (XLU rolls + VPU maxes) --------
    # Stage 1: lane l -> max(xf[l-kw+1 : l+1]) (within a row).
    # Stage 2: lane (oh*kh+kh-1)*W + ow*kw + kw-1 holds the (oh, ow) window max.
    m = xf
    s = 1
    while s < kw:
        m = jnp.maximum(m, pltpu.roll(m, shift=s, axis=1))
        s *= 2
    s = W
    while s < kh * W:
        m = jnp.maximum(m, pltpu.roll(m, shift=s, axis=1))
        s *= 2

    # ---- one MXU matmul: avg-pool (S block) + max-lane gather (G block) ----
    p_in = jnp.concatenate([xf, m], axis=-1)               # (C, 2*H*W)
    pooled = jnp.dot(p_in, m_ref[...],
                     preferred_element_type=jnp.float32)   # (C, 2P) = [avg | max]

    # ---- fc2(relu(fc1(.))): tiny CxC layers as VPU broadcast-MACs ----------
    # fc1 applied once to the lane-concatenated [avg | max]; fc2 once to the
    # relu'd sum (fc2 is linear) -> numerically identical to the module.
    w1 = w_ref[0]                                          # (C, C)
    w2 = w_ref[1]                                          # (C, C)
    h = w1[:, 0:1] * pooled[0:1, :]
    for k in range(1, C):
        h = h + w1[:, k:k + 1] * pooled[k:k + 1, :]
    h = jnp.maximum(h, 0.0)                                # (C, 2P)
    g = h[:, :P] + h[:, P:]                                # (C, P)
    o = w2[:, 0:1] * g[0:1, :]
    for k in range(1, C):
        o = o + w2[:, k:k + 1] * g[k:k + 1, :]
    o_ref[...] = o                                         # (C, P)


def prepare_params(w1, w2):
    """Stack the two 1x1-conv weights once, outside the per-step hot path."""
    return jnp.stack([w1, w2], axis=0)                     # (2, C, C)


def channel_attention(x, w_stacked, pool=4):
    """x: (1, 4, H, W) f32 NCHW with H, W multiples of `pool` (pow2 windows);
    w_stacked: (2, 4, 4) f32 from prepare_params(w1, w2)."""
    B, C, H, W = x.shape
    assert B == 1 and C == 4 and pool * pool == 16, (
        "module's .view(1,4,1,16) requires B=1, C=4, pool=4")
    assert H % pool == 0 and W % pool == 0, (
        "adaptive pooling only matches fixed windows when H, W divide evenly")
    kh, kw = H // pool, W // pool
    assert _is_pow2(kh) and _is_pow2(kw), "log-step max reduce needs pow2 windows"

    x_flat = x.reshape(C, H * W)          # row-major dim merge: metadata only
    mconst = jnp.asarray(_pool_matrix(H, W, pool))

    out = pl.pallas_call(
        functools.partial(channel_attention_kernel, pool=pool, H=H, W=W),
        out_shape=jax.ShapeDtypeStruct((C, pool * pool), jnp.float32),
        in_specs=[
            pl.BlockSpec(memory_space=pltpu.MemorySpace.VMEM),  # x (C, H*W)
            pl.BlockSpec(memory_space=pltpu.MemorySpace.VMEM),  # pooling const
            pl.BlockSpec(memory_space=pltpu.MemorySpace.VMEM),  # stacked w1/w2
        ],
        out_specs=pl.BlockSpec(memory_space=pltpu.MemorySpace.VMEM),
    )(x_flat, mconst, w_stacked)

    # .view(1, 4, 1, 16): pure metadata reshape of the contiguous (4, 16).
    return out.reshape(1, C, 1, pool * pool)


def _reference(x, w1, w2, pool=4):
    """Pure-JAX reference mirroring the PyTorch forward."""
    B, C, H, W = x.shape
    kh, kw = H // pool, W // pool
    hp = jax.lax.Precision.HIGHEST
    xr = x.reshape(B, C, pool, kh, pool, kw)
    avg_p = xr.mean(axis=(3, 5)).reshape(C, pool * pool)
    max_p = xr.max(axis=(3, 5)).reshape(C, pool * pool)
    avg_out = jnp.dot(w2, jnp.maximum(jnp.dot(w1, avg_p, precision=hp), 0.0),
                      precision=hp)
    max_out = jnp.dot(w2, jnp.maximum(jnp.dot(w1, max_p, precision=hp), 0.0),
                      precision=hp)
    return (avg_out + max_out).reshape(1, C, 1, pool * pool)


if __name__ == "__main__":
    key = jax.random.PRNGKey(0)
    kx, k1, k2 = jax.random.split(key, 3)

    # Shapes consistent with the module's final .view(1,4,1,16):
    # B=1, C=4, H=W=16, pool=4  ->  pooled output (1,4,4,4) has 64 elements.
    x = jax.random.normal(kx, (1, 4, 16, 16), dtype=jnp.float32)

    # Conv2d(4, 4, 1, bias=False) weights, squeezed from (4,4,1,1) to (4,4).
    w1 = jax.random.normal(k1, (4, 4), dtype=jnp.float32) * 0.5
    w2 = jax.random.normal(k2, (4, 4), dtype=jnp.float32) * 0.5

    w_stacked = prepare_params(w1, w2)
    out = channel_attention(x, w_stacked, pool=4)
    out = jax.block_until_ready(out)

    ref = _reference(x, w1, w2, pool=4)
    assert out.shape == (1, 4, 1, 16)
    assert jnp.allclose(out, ref, atol=1e-4, rtol=1e-4), (
        float(jnp.max(jnp.abs(out - ref))))

    print("KERNEL_OK")
</pallas_src>

<mosaic_0001>
module attributes {stable_mosaic.version = 11 : i64} {
  func.func @channel_attention_kernel(%arg0: memref<4x256xf32, #tpu.memory_space<vmem>>, %arg1: memref<512x32xf32, #tpu.memory_space<vmem>>, %arg2: memref<2x4x4xf32, #tpu.memory_space<vmem>>, %arg3: memref<4x16xf32, #tpu.memory_space<vmem>>) attributes {dimension_semantics = [], scalar_prefetch = 0 : i64, scratch_operands = 0 : i64, tpu.core_type = #tpu.core_type<tc>} {
    %c0 = arith.constant 0 : index
    %c0_0 = arith.constant 0 : index
    %0 = vector.load %arg0[%c0, %c0_0] : memref<4x256xf32, #tpu.memory_space<vmem>>, vector<4x256xf32>
    %c1_i32 = arith.constant 1 : i32
    %1 = tpu.dynamic_rotate %0 by %c1_i32 dim 1 : vector<4x256xf32>, i32 -> vector<4x256xf32>
    %2 = arith.maximumf %0, %1 : vector<4x256xf32>
    %c2_i32 = arith.constant 2 : i32
    %3 = tpu.dynamic_rotate %2 by %c2_i32 dim 1 : vector<4x256xf32>, i32 -> vector<4x256xf32>
    %4 = arith.maximumf %2, %3 : vector<4x256xf32>
    %c16_i32 = arith.constant 16 : i32
    %5 = tpu.dynamic_rotate %4 by %c16_i32 dim 1 : vector<4x256xf32>, i32 -> vector<4x256xf32>
    %6 = arith.maximumf %4, %5 : vector<4x256xf32>
    %c32_i32 = arith.constant 32 : i32
    %7 = tpu.dynamic_rotate %6 by %c32_i32 dim 1 : vector<4x256xf32>, i32 -> vector<4x256xf32>
    %8 = arith.maximumf %6, %7 : vector<4x256xf32>
    %9 = tpu.concatenate %0, %8 in 1 : vector<4x256xf32>, vector<4x256xf32> -> vector<4x512xf32>
    %c0_1 = arith.constant 0 : index
    %c0_2 = arith.constant 0 : index
    %10 = vector.load %arg1[%c0_1, %c0_2] : memref<512x32xf32, #tpu.memory_space<vmem>>, vector<512x32xf32>
    %cst = arith.constant dense<0.000000e+00> : vector<4x32xf32>
    %11 = tpu.matmul %9, %10, %cst {dimension_numbers = #tpu.dot_dimension_numbers<[1], [0], [0], [1], [0, 0, 1, 1], [], []>} : vector<4x512xf32>, vector<512x32xf32>, vector<4x32xf32> -> vector<4x32xf32>
    %c0_3 = arith.constant 0 : index
    %c0_4 = arith.constant 0 : index
    %c0_5 = arith.constant 0 : index
    %12 = vector.load %arg2[%c0_3, %c0_4, %c0_5] : memref<2x4x4xf32, #tpu.memory_space<vmem>>, vector<1x4x4xf32>
    %13 = vector.shape_cast %12 : vector<1x4x4xf32> to vector<4x4xf32>
    %c1 = arith.constant 1 : index
    %c0_6 = arith.constant 0 : index
    %c0_7 = arith.constant 0 : index
    %14 = vector.load %arg2[%c1, %c0_6, %c0_7] : memref<2x4x4xf32, #tpu.memory_space<vmem>>, vector<1x4x4xf32>
    %15 = vector.shape_cast %14 : vector<1x4x4xf32> to vector<4x4xf32>
    %16 = vector.extract_strided_slice %13 {offsets = [0, 0], sizes = [4, 1], strides = [1, 1]} : vector<4x4xf32> to vector<4x1xf32>
    %17 = vector.extract_strided_slice %11 {offsets = [0, 0], sizes = [1, 32], strides = [1, 1]} : vector<4x32xf32> to vector<1x32xf32>
    %18 = vector.broadcast %16 : vector<4x1xf32> to vector<4x32xf32>
    %19 = vector.broadcast %17 : vector<1x32xf32> to vector<4x32xf32>
    %20 = arith.mulf %18, %19 : vector<4x32xf32>
    %21 = vector.extract_strided_slice %13 {offsets = [0, 1], sizes = [4, 1], strides = [1, 1]} : vector<4x4xf32> to vector<4x1xf32>
    %22 = vector.extract_strided_slice %11 {offsets = [1, 0], sizes = [1, 32], strides = [1, 1]} : vector<4x32xf32> to vector<1x32xf32>
    %23 = vector.broadcast %21 : vector<4x1xf32> to vector<4x32xf32>
    %24 = vector.broadcast %22 : vector<1x32xf32> to vector<4x32xf32>
    %25 = arith.mulf %23, %24 : vector<4x32xf32>
    %26 = arith.addf %20, %25 : vector<4x32xf32>
    %27 = vector.extract_strided_slice %13 {offsets = [0, 2], sizes = [4, 1], strides = [1, 1]} : vector<4x4xf32> to vector<4x1xf32>
    %28 = vector.extract_strided_slice %11 {offsets = [2, 0], sizes = [1, 32], strides = [1, 1]} : vector<4x32xf32> to vector<1x32xf32>
    %29 = vector.broadcast %27 : vector<4x1xf32> to vector<4x32xf32>
    %30 = vector.broadcast %28 : vector<1x32xf32> to vector<4x32xf32>
    %31 = arith.mulf %29, %30 : vector<4x32xf32>
    %32 = arith.addf %26, %31 : vector<4x32xf32>
    %33 = vector.extract_strided_slice %13 {offsets = [0, 3], sizes = [4, 1], strides = [1, 1]} : vector<4x4xf32> to vector<4x1xf32>
    %34 = vector.extract_strided_slice %11 {offsets = [3, 0], sizes = [1, 32], strides = [1, 1]} : vector<4x32xf32> to vector<1x32xf32>
    %35 = vector.broadcast %33 : vector<4x1xf32> to vector<4x32xf32>
    %36 = vector.broadcast %34 : vector<1x32xf32> to vector<4x32xf32>
    %37 = arith.mulf %35, %36 : vector<4x32xf32>
    %38 = arith.addf %32, %37 : vector<4x32xf32>
    %cst_8 = arith.constant 0.000000e+00 : f32
    %39 = vector.broadcast %cst_8 : f32 to vector<4x32xf32>
    %40 = arith.maximumf %38, %39 : vector<4x32xf32>
    %41 = vector.extract_strided_slice %40 {offsets = [0, 0], sizes = [4, 16], strides = [1, 1]} : vector<4x32xf32> to vector<4x16xf32>
    %42 = vector.extract_strided_slice %40 {offsets = [0, 16], sizes = [4, 16], strides = [1, 1]} : vector<4x32xf32> to vector<4x16xf32>
    %43 = arith.addf %41, %42 : vector<4x16xf32>
    %44 = vector.extract_strided_slice %15 {offsets = [0, 0], sizes = [4, 1], strides = [1, 1]} : vector<4x4xf32> to vector<4x1xf32>
    %45 = vector.extract_strided_slice %43 {offsets = [0, 0], sizes = [1, 16], strides = [1, 1]} : vector<4x16xf32> to vector<1x16xf32>
    %46 = vector.broadcast %44 : vector<4x1xf32> to vector<4x16xf32>
    %47 = vector.broadcast %45 : vector<1x16xf32> to vector<4x16xf32>
    %48 = arith.mulf %46, %47 : vector<4x16xf32>
    %49 = vector.extract_strided_slice %15 {offsets = [0, 1], sizes = [4, 1], strides = [1, 1]} : vector<4x4xf32> to vector<4x1xf32>
    %50 = vector.extract_strided_slice %43 {offsets = [1, 0], sizes = [1, 16], strides = [1, 1]} : vector<4x16xf32> to vector<1x16xf32>
    %51 = vector.broadcast %49 : vector<4x1xf32> to vector<4x16xf32>
    %52 = vector.broadcast %50 : vector<1x16xf32> to vector<4x16xf32>
    %53 = arith.mulf %51, %52 : vector<4x16xf32>
    %54 = arith.addf %48, %53 : vector<4x16xf32>
    %55 = vector.extract_strided_slice %15 {offsets = [0, 2], sizes = [4, 1], strides = [1, 1]} : vector<4x4xf32> to vector<4x1xf32>
    %56 = vector.extract_strided_slice %43 {offsets = [2, 0], sizes = [1, 16], strides = [1, 1]} : vector<4x16xf32> to vector<1x16xf32>
    %57 = vector.broadcast %55 : vector<4x1xf32> to vector<4x16xf32>
    %58 = vector.broadcast %56 : vector<1x16xf32> to vector<4x16xf32>
    %59 = arith.mulf %57, %58 : vector<4x16xf32>
    %60 = arith.addf %54, %59 : vector<4x16xf32>
    %61 = vector.extract_strided_slice %15 {offsets = [0, 3], sizes = [4, 1], strides = [1, 1]} : vector<4x4xf32> to vector<4x1xf32>
    %62 = vector.extract_strided_slice %43 {offsets = [3, 0], sizes = [1, 16], strides = [1, 1]} : vector<4x16xf32> to vector<1x16xf32>
    %63 = vector.broadcast %61 : vector<4x1xf32> to vector<4x16xf32>
    %64 = vector.broadcast %62 : vector<1x16xf32> to vector<4x16xf32>
    %65 = arith.mulf %63, %64 : vector<4x16xf32>
    %66 = arith.addf %60, %65 : vector<4x16xf32>
    %c0_9 = arith.constant 0 : index
    %c0_10 = arith.constant 0 : index
    %67 = vector.load %arg3[%c0_9, %c0_10] : memref<4x16xf32, #tpu.memory_space<vmem>>, vector<4x16xf32>
    tpu.vector_store %arg3[%c0_9, %c0_10], %66 {strides = array<i32>} : memref<4x16xf32, #tpu.memory_space<vmem>>, vector<4x16xf32>,
    return
  }
}

</mosaic_0001>

<bundles_post_ra>
// kernel: tpu_custom_call.1
= control target key start
LH: loop header
LB: loop body
LE: loop exit
PB: predicated region body
PF: predicated region fallthrough
CT: control target
= control target key end

     0   :  { %s638_s0 = inlined_call_operand.vmem [shape: f32[4,256], index: 0, kind: input, shape index: {}]   ;;  %s639_s1 = inlined_call_operand.vmem [shape: f32[512,32], index: 1, kind: input, shape index: {}]   ;;  %s640_s2 = inlined_call_operand.vmem [shape: f32[2,4,4], index: 2, kind: input, shape index: {}]   ;;  %s641_s3 = inlined_call_operand.hbm [shape: f32[4,16], index: 3, kind: output, shape index: {}]  }
   0x1   :  { %v410_v0 = vld [vmem:[%s638_s0] sm:$0xff] }
   0x2   :  { %8 = vsyncpa [#allocation3], 0  ;;  %17 = vst [vmem:[#allocation1] ss:$2 sm:$0xff] %v410_v0  ;;  %s377_s14 = smov 1   ;;  %v26_v3 = vlaneseq  ;;  %vm34_vm1 = vcmask 1043456  }
   0x3   :  { %s378_s0 = smov 2   ;;  %s379_s15 = smov 16   ;;  %v153_v23 = vld [vmem:[%s639_s1 + $0x178] sm:$0xff]  ;;  %v152_v25 = vld [vmem:[%s639_s1 + $0x170] sm:$0xff]  ;;  %v151_v30 = vld [vmem:[%s639_s1 + $0x168] sm:$0xff]  ;;  %vm315_vm5 = vcmask 125952  }
   0x4   :  { %v413_v5 = vand.u32 127, %v26_v3  ;;  %v169_v24 = vld [vmem:[%s639_s1 + $0x1f8] sm:$0xff]  ;;  %210 = vmatpush.msra.mxu2 %v153_v23  ;;  %v168_v26 = vld [vmem:[%s639_s1 + $0x1f0] sm:$0xff]  ;;  %v167_v31 = vld [vmem:[%s639_s1 + $0x1e8] sm:$0xff]  ;;  %s380_s24 = smov 32   ;;  %s386_s9 = smov [#allocation2]  }
   0x5   :  { %230 = vmatpush.msra.mxu3 %v169_v24  ;;  %v121_v27 = vld [vmem:[%s639_s1 + $0x78] sm:$0xff]  ;;  %v120_v32 = vld [vmem:[%s639_s1 + $0x70] sm:$0xff]  ;;  %v150_v34 = vld [vmem:[%s639_s1 + $0x160] sm:$0xff]  ;;  %s322_s10 = sshll.u32 %s386_s9, 4  ;;  %s324_s13 = sshll.u32 %s641_s3, 4  ;;  %s323_s10 = int_to_ptr.vmem [resolvable:$true] %s322_s10  ;;  %s325_s13 = int_to_ptr.hbm [resolvable:$true] %s324_s13 }
   0x6   :  { %vm28_vm0 = vcmp.lt.s32.totalorder %v413_v5, 1  ;;  %vm48_vm2 = vcmp.lt.s32.totalorder %v413_v5, 2  ;;  %v137_v28 = vld [vmem:[%s639_s1 + $0xf8] sm:$0xff]  ;;  %170 = vmatpush.msra.mxu0 %v121_v27  ;;  %211 = vmatpush.msra.mxu2 %v152_v25  ;;  %v136_v33 = vld [vmem:[%s639_s1 + $0xf0] sm:$0xff]  ;;  %v166_v35 = vld [vmem:[%s639_s1 + $0x1e0] sm:$0xff]  ;;  %vm67_vm3 = vcmp.lt.s32.totalorder %v413_v5, 16 }
   0x7   :  { %190 = vmatpush.msra.mxu1 %v137_v28  ;;  %231 = vmatpush.msra.mxu3 %v168_v26  ;;  %v119_v36 = vld [vmem:[%s639_s1 + $0x68] sm:$0xff]  ;;  %v118_v38 = vld [vmem:[%s639_s1 + $0x60] sm:$0xff]  ;;  %v149_v40 = vld [vmem:[%s639_s1 + $0x158] sm:$0xff]  ;;  %vm86_vm4 = vcmp.lt.s32.totalorder %v413_v5, 32 }
   0x8   :  { %171 = vmatpush.msra.mxu0 %v120_v32  ;;  %v135_v37 = vld [vmem:[%s639_s1 + $0xe8] sm:$0xff]  ;;  %212 = vmatpush.msra.mxu2 %v151_v30  ;;  %v134_v39 = vld [vmem:[%s639_s1 + $0xe0] sm:$0xff]  ;;  %v165_v41 = vld [vmem:[%s639_s1 + $0x1d8] sm:$0xff] }
   0x9   :  { %v18_v1 = vld.sshfl [vmem:[#allocation1] sm:$0xff pattern:$0x75316420]  ;;  %v19_v2 = vld.sshfl [vmem:[#allocation1 + $0x8] sm:$0xff pattern:$0x75316420]  ;;  %191 = vmatpush.msra.mxu1 %v136_v33  ;;  %232 = vmatpush.msra.mxu3 %v167_v31 }
   0xa   :  { %22 = vrot.lane.b32.xlu0 %v18_v1, %s377_s14  ;;  %172 = vmatpush.msra.mxu0 %v119_v36  ;;  %v117_v42 = vld [vmem:[%s639_s1 + $0x58] sm:$0xff]  ;;  %v148_v44 = vld [vmem:[%s639_s1 + $0x150] sm:$0xff]  ;;  %v147_v49 = vld [vmem:[%s639_s1 + $0x148] sm:$0xff]  ;;  %v382_v36 = vmov 2  }
   0xb   :  { %192 = vmatpush.msra.mxu1 %v135_v37  ;;  %213 = vmatpush.msra.mxu2 %v150_v34  ;;  %v133_v43 = vld [vmem:[%s639_s1 + $0xd8] sm:$0xff]  ;;  %v164_v45 = vld [vmem:[%s639_s1 + $0x1d0] sm:$0xff]  ;;  %v163_v50 = vld [vmem:[%s639_s1 + $0x1c8] sm:$0xff]  ;;  %v381_v34 = vmov 1  }
   0xc   :  { %233 = vmatpush.msra.mxu3 %v166_v35  ;;  %173 = vmatpush.msra.mxu0 %v118_v38  ;;  %v116_v46 = vld [vmem:[%s639_s1 + $0x50] sm:$0xff]  ;;  %v115_v52 = vld [vmem:[%s639_s1 + $0x48] sm:$0xff]  ;;  %v146_v55 = vld [vmem:[%s639_s1 + $0x140] sm:$0xff]  ;;  %v383_v38 = vmov 0  }
   0xd   :  { %193 = vmatpush.msra.mxu1 %v134_v39  ;;  %214 = vmatpush.msra.mxu2 %v149_v40  ;;  %v132_v47 = vld [vmem:[%s639_s1 + $0xd0] sm:$0xff]  ;;  %v131_v53 = vld [vmem:[%s639_s1 + $0xc8] sm:$0xff]  ;;  %v162_v56 = vld [vmem:[%s639_s1 + $0x1c0] sm:$0xff]  ;;  %v384_v40 = vmov 3  }
   0xe   :  { %234 = vmatpush.msra.mxu3 %v165_v41  ;;  %174 = vmatpush.msra.mxu0 %v117_v42  ;;  %v145_v59 = vld [vmem:[%s639_s1 + $0x138] sm:$0xff]  ;;  %v114_v1 = vld [vmem:[%s639_s1 + $0x40] sm:$0xff]  ;;  %v144_v3 = vld [vmem:[%s639_s1 + $0x130] sm:$0xff] }
   0xf   :  { %194 = vmatpush.msra.mxu1 %v133_v43  ;;  %215 = vmatpush.msra.mxu2 %v148_v44  ;;  %v161_v60 = vld [vmem:[%s639_s1 + $0x1b8] sm:$0xff]  ;;  %v139_v23 = vld [vmem:[%s639_s1 + $0x108] sm:$0xff]  ;;  %v108_v25 = vld [vmem:[%s639_s1 + $0x10] sm:$0xff] }
  0x10   :  { %235 = vmatpush.msra.mxu3 %v164_v45  ;;  %175 = vmatpush.msra.mxu0 %v116_v46  ;;  %v155_v24 = vld [vmem:[%s639_s1 + $0x188] sm:$0xff]  ;;  %v124_v26 = vld [vmem:[%s639_s1 + $0x90] sm:$0xff]  ;;  %v138_v27 = vld [vmem:[%s639_s1 + $0x100] sm:$0xff] }
  0x11   :  { %195 = vmatpush.msra.mxu1 %v132_v47  ;;  %216 = vmatpush.msra.mxu2 %v147_v49  ;;  %v154_v28 = vld [vmem:[%s639_s1 + $0x180] sm:$0xff]  ;;  %v123_v30 = vld [vmem:[%s639_s1 + $0x88] sm:$0xff] }
  0x12   :  { %24 = vrot.lane.b32.xlu0 %v19_v2, %s377_s14  ;;  %236 = vmatpush.msra.mxu3 %v163_v50  ;;  %v130_v2 = vld [vmem:[%s639_s1 + $0xc0] sm:$0xff] }
  0x13   :  { %176 = vmatpush.msra.mxu0 %v115_v52  ;;  %196 = vmatpush.msra.mxu1 %v131_v53  ;;  %v106_v31 = vld [vmem:[%s639_s1] sm:$0xff] }
  0x14   :  { %217 = vmatpush.msra.mxu2 %v146_v55  ;;  %237 = vmatpush.msra.mxu3 %v162_v56  ;;  %v122_v32 = vld [vmem:[%s639_s1 + $0x80] sm:$0xff] }
  0x15   :  { %177 = vmatpush.msra.mxu0 %v114_v1  ;;  %197 = vmatpush.msra.mxu1 %v130_v2  ;;  %v250_v35 = vld [vmem:[%s640_s2] sm:$0xf]  ;;  %v333_v39 = vld [vmem:[%s640_s2 + $0x4] sm:$0xf]  ;;  %s385_s2 = smov 112  }
  0x16   :  { %218 = vmatpush.msra.mxu2 %v145_v59  ;;  %238 = vmatpush.msra.mxu3 %v161_v60 }
  0x17   :  { %345 = vset.pattern.permute.xlu0 %v381_v34  ;;  %346 = vset.pattern.permute.xlu1 %v382_v36 }
  0x18   :  { %219 = vmatpush.msra.mxu2 %v144_v3  ;;  %344 = vset.pattern.permute.xlu2 %v383_v38 }
  0x7c   :  { %v23_v4 = vpop.permute.xlu0 %22 }
  0x84   :  { %v25_v6 = vpop.permute.xlu0 %24 }
  0x85   :  { %v29_v7 = vsel %vm28_vm0, %v23_v4, %v25_v6  ;;  %v30_v9 = vsel %vm28_vm0, %v25_v6, %v23_v4  ;;  %v160_v4 = vld [vmem:[%s639_s1 + $0x1b0] sm:$0xff]  ;;  %v129_v6 = vld [vmem:[%s639_s1 + $0xb8] sm:$0xff] }
  0x86   :  { %v33_v8 = vrot.slane %v29_v7, 4  ;;  %239 = vmatpush.msra.mxu3 %v160_v4  ;;  %v143_v7 = vld [vmem:[%s639_s1 + $0x128] sm:$0xff]  ;;  %198 = vmatpush.msra.mxu1 %v129_v6 }
  0x87   :  { %220 = vmatpush.msra.mxu2 %v143_v7 }
  0x88   :  { %v35_v10 = vsel %vm34_vm1, %v30_v9, %v33_v8  ;;  %v159_v8 = vld [vmem:[%s639_s1 + $0x1a8] sm:$0xff]  ;;  %v112_v9 = vld [vmem:[%s639_s1 + $0x30] sm:$0xff] }
  0x89   :  { %v37_v11 = vmax.f32 %v410_v0, %v35_v10  ;;  %240 = vmatpush.msra.mxu3 %v159_v8  ;;  %v128_v10 = vld [vmem:[%s639_s1 + $0xb0] sm:$0xff] }
  0x8a   :  { %199 = vmatpush.msra.mxu1 %v128_v10 }
  0x8b   :  { %39 = vst [vmem:[#allocation1] ss:$2 sm:$0xff] %v37_v11 }
  0x92   :  { %v40_v12 = vld.sshfl [vmem:[#allocation1] sm:$0xff pattern:$0x75316420]  ;;  %v41_v13 = vld.sshfl [vmem:[#allocation1 + $0x8] sm:$0xff pattern:$0x75316420] }
  0x93   :  { %44 = vrot.lane.b32.xlu1 %v40_v12, %s378_s0  ;;  %v158_v12 = vld [vmem:[%s639_s1 + $0x1a0] sm:$0xff] }
  0x94   :  { %241 = vmatpush.msra.mxu3 %v158_v12 }
  0x9b   :  { %46 = vrot.lane.b32.xlu1 %v41_v13, %s378_s0  ;;  %v111_v13 = vld [vmem:[%s639_s1 + $0x28] sm:$0xff] }
 0x105   :  { %v45_v14 = vpop.permute.xlu1 %44 }
 0x10d   :  { %v47_v15 = vpop.permute.xlu1 %46 }
 0x10e   :  { %v49_v16 = vsel %vm48_vm2, %v45_v14, %v47_v15  ;;  %v50_v18 = vsel %vm48_vm2, %v47_v15, %v45_v14  ;;  %v127_v14 = vld [vmem:[%s639_s1 + $0xa8] sm:$0xff]  ;;  %v141_v15 = vld [vmem:[%s639_s1 + $0x118] sm:$0xff] }
 0x10f   :  { %v53_v17 = vrot.slane %v49_v16, 4  ;;  %200 = vmatpush.msra.mxu1 %v127_v14  ;;  %v157_v16 = vld [vmem:[%s639_s1 + $0x198] sm:$0xff] }
 0x110   :  { %242 = vmatpush.msra.mxu3 %v157_v16 }
 0x111   :  { %v54_v19 = vsel %vm34_vm1, %v50_v18, %v53_v17  ;;  %v110_v17 = vld [vmem:[%s639_s1 + $0x20] sm:$0xff] }
 0x112   :  { %v420_v20 = vmax.f32 %v37_v11, %v54_v19  ;;  %v142_v11 = vld [vmem:[%s639_s1 + $0x120] sm:$0xff]  ;;  %v140_v19 = vld [vmem:[%s639_s1 + $0x110] sm:$0xff] }
 0x113   :  { %221 = vmatpush.msra.mxu2 %v142_v11  ;;  %v126_v18 = vld [vmem:[%s639_s1 + $0xa0] sm:$0xff] }
 0x114   :  { %58 = vst [vmem:[#allocation1] ss:$2 sm:$0xff] %v420_v20  ;;  %201 = vmatpush.msra.mxu1 %v126_v18 }
 0x115   :  { %222 = vmatpush.msra.mxu2 %v141_v15 }
 0x117   :  { %223 = vmatpush.msra.mxu2 %v140_v19 }
 0x119   :  { %224 = vmatpush.msra.mxu2 %v139_v23 }
 0x11b   :  { %v59_v21 = vld.sshfl [vmem:[#allocation1] sm:$0xff pattern:$0x75316420]  ;;  %v60_v22 = vld.sshfl [vmem:[#allocation1 + $0x8] sm:$0xff pattern:$0x75316420]  ;;  %225 = vmatpush.msra.mxu2 %v138_v27 }
 0x11c   :  { %63 = vrot.lane.b32.xlu2 %v59_v21, %s379_s15  ;;  %v109_v21 = vld [vmem:[%s639_s1 + $0x18] sm:$0xff] }
 0x124   :  { %65 = vrot.lane.b32.xlu2 %v60_v22, %s379_s15  ;;  %v125_v22 = vld [vmem:[%s639_s1 + $0x98] sm:$0xff] }
 0x125   :  { %202 = vmatpush.msra.mxu1 %v125_v22 }
 0x127   :  { %203 = vmatpush.msra.mxu1 %v124_v26 }
 0x129   :  { %204 = vmatpush.msra.mxu1 %v123_v30 }
 0x12b   :  { %205 = vmatpush.msra.mxu1 %v122_v32 }
 0x12c   :  { %255 = vperm.xlu2 %344, %v250_v35  }
 0x134   :  { %347 = vset.pattern.permute.xlu2 %v384_v40 }
 0x135   :  { %275 = vperm.xlu2 %347, %v250_v35  }
 0x13d   :  { %348 = vset.pattern.permute.xlu2 %v383_v38 }
 0x13e   :  { %289 = vperm.xlu2 %348, %v333_v39  }
 0x146   :  { %349 = vset.pattern.permute.xlu2 %v384_v40 }
 0x147   :  { %309 = vperm.xlu2 %349, %v333_v39  }
 0x176   :  { %v64_v29 = vpop.permute.xlu2 %63 }
 0x17e   :  { %v66_v48 = vpop.permute.xlu2 %65 }
 0x17f   :  { %v68_v51 = vsel %vm67_vm3, %v64_v29, %v66_v48  ;;  %v69_v57 = vsel %vm67_vm3, %v66_v48, %v64_v29  ;;  %v107_v29 = vld [vmem:[%s639_s1 + $0x8] sm:$0xff] }
 0x180   :  { %v72_v54 = vrot.slane %v68_v51, 4 }
 0x182   :  { %v73_v58 = vsel %vm34_vm1, %v69_v57, %v72_v54 }
 0x183   :  { %v526_v61 = vmax.f32 %v420_v20, %v73_v58  ;;  %v156_v20 = vld [vmem:[%s639_s1 + $0x190] sm:$0xff] }
 0x184   :  { %243 = vmatpush.msra.mxu3 %v156_v20 }
 0x185   :  { %77 = vst [vmem:[#allocation1] ss:$2 sm:$0xff] %v526_v61 }
 0x186   :  { %244 = vmatpush.msra.mxu3 %v155_v24  ;;  %v256_v52 = vpop.permute.xlu2 %255 }
 0x188   :  { %245 = vmatpush.msra.mxu3 %v154_v28 }
 0x18c   :  { %v79_v62 = vld.sshfl [vmem:[#allocation1 + $0x8] sm:$0xff pattern:$0x75316420]  ;;  %v78_v63 = vld.sshfl [vmem:[#allocation1] sm:$0xff pattern:$0x75316420] }
 0x18d   :  { %84 = vrot.lane.b32.xlu1 %v79_v62, %s380_s24  ;;  %82 = vrot.lane.b32.xlu0 %v78_v63, %s380_s24  ;;  %95 = vst [vmem:[#allocation1] ss:$2 sm:$0xff] %v410_v0  ;;  %v113_v0 = vld [vmem:[%s639_s1 + $0x38] sm:$0xff] }
 0x18e   :  { %178 = vmatpush.msra.mxu0 %v113_v0 }
 0x18f   :  { %v276_v2 = vpop.permute.xlu2 %275 }
 0x190   :  { %179 = vmatpush.msra.mxu0 %v112_v9 }
 0x192   :  { %180 = vmatpush.msra.mxu0 %v111_v13 }
 0x194   :  { %181 = vmatpush.msra.mxu0 %v110_v17  ;;  %v96_v33 = vld.sshfl [vmem:[#allocation1] sm:$0xff pattern:$0x75316420]  ;;  %v97_v37 = vld.sshfl [vmem:[#allocation1 + $0x8] sm:$0xff pattern:$0x75316420] }
 0x195   :  { %206 = vmatmul.f32.vlgmr.msra.gmra.mxu1 %v97_v37  ;;  %261 = vperm.xlu0 %345, %v250_v35  }
 0x196   :  { %182 = vmatpush.msra.mxu0 %v109_v21  ;;  %268 = vperm.xlu1 %346, %v250_v35  }
 0x198   :  { %183 = vmatpush.msra.mxu0 %v108_v25  ;;  %v290_v9 = vpop.permute.xlu2 %289 }
 0x19a   :  { %184 = vmatpush.msra.mxu0 %v107_v29 }
 0x19c   :  { %185 = vmatpush.msra.mxu0 %v106_v31 }
 0x19d   :  { %186 = vmatmul.f32.vlgmr.msra.gmra.mxu0 %v96_v33  ;;  %295 = vperm.xlu0 %345, %v333_v39  }
 0x1a1   :  { %v310_v19 = vpop.permute.xlu2 %309 }
 0x1a5   :  { %350 = vset.pattern.permute.xlu0 %v384_v40 }
 0x1ff   :  { %v85_v41 = vpop.permute.xlu1 %84  ;;  %v83_v42 = vpop.permute.xlu0 %82 }
 0x200   :  { %v87_v43 = vsel %vm86_vm4, %v83_v42, %v85_v41  ;;  %v88_v45 = vsel %vm86_vm4, %v85_v41, %v83_v42 }
 0x201   :  { %v91_v44 = vrot.slane %v87_v43, 4 }
 0x203   :  { %v92_v46 = vsel %vm34_vm1, %v88_v45, %v91_v44 }
 0x204   :  { %v94_v47 = vmax.f32 %v526_v61, %v92_v46 }
 0x206   :  { %101 = vst [vmem:[#allocation1] ss:$2 sm:$0xff] %v94_v47 }
 0x207   :  { %v262_v60 = vpop.permute.xlu0 %261 }
 0x208   :  { %v269_v61 = vpop.permute.xlu1 %268 }
 0x20d   :  { %v102_v48 = vld.sshfl [vmem:[#allocation1] sm:$0xff pattern:$0x75316420]  ;;  %v103_v49 = vld.sshfl [vmem:[#allocation1 + $0x8] sm:$0xff pattern:$0x75316420] }
 0x20e   :  { %226 = vmatmul.f32.vlgmr.msra.gmra.mxu2 %v102_v48  ;;  %246 = vmatmul.f32.vlgmr.msra.gmra.mxu3 %v103_v49 }
 0x20f   :  { %v296_v14 = vpop.permute.xlu0 %295 }
 0x212   :  { %v207_v50 = vpop.f32.mrf.mxu1 }
 0x21a   :  { %v187_v5 = vpop.f32.mrf.mxu0 }
 0x21b   :  { %v208_v51 = vadd.f32 %v207_v50, %v187_v5 }
 0x291   :  { %v227_v53 = vpop.f32.mrf.mxu2  ;;  %v247_v55 = vpop.f32.mrf.mxu3 }
 0x292   :  { %v228_v54 = vadd.f32 %v227_v53, %v208_v51 }
 0x294   :  { %v248_v56 = vadd.f32 %v247_v55, %v228_v54 }
 0x296   :  { %v258_v57 = vperm.slane %v248_v56, 0  ;;  %v264_v58 = vperm.slane %v248_v56, 1  ;;  %v271_v59 = vperm.slane %v248_v56, 2  ;;  %v278_v1 = vperm.slane %v248_v56, 3 }
 0x298   :  { %v259_v62 = vmul.f32 %v258_v57, %v256_v52  ;;  %v265_v63 = vmul.f32 %v264_v58, %v262_v60  ;;  %v272_v4 = vmul.f32 %v271_v59, %v269_v61  ;;  %v279_v6 = vmul.f32 %v278_v1, %v276_v2 }
 0x29a   :  { %v266_v3 = vadd.f32 %v265_v63, %v259_v62 }
 0x29c   :  { %v273_v0 = vadd.f32 %v272_v4, %v266_v3 }
 0x29e   :  { %v280_v7 = vadd.f32 %v279_v6, %v273_v0 }
 0x2a0   :  { %v281_v8 = vmax.f32 %v280_v7, 0.0 }
 0x2a2   :  { %283 = vrot.lane.b32.xlu1 %v281_v8, %s385_s2 }
 0x2aa   :  { %302 = vperm.xlu1 %346, %v333_v39  }
 0x314   :  { %v284_v10 = vpop.permute.xlu1 %283 }
 0x315   :  { %v286_v11 = vadd.f32 %v284_v10, %v281_v8 }
 0x317   :  { %v292_v12 = vperm.slane %v286_v11, 0  ;;  %v298_v13 = vperm.slane %v286_v11, 1  ;;  %v312_v17 = vperm.slane %v286_v11, 3  ;;  %v305_v18 = vperm.slane %v286_v11, 2 }
 0x319   :  { %v299_v15 = vmul.f32 %v298_v13, %v296_v14  ;;  %v293_v16 = vmul.f32 %v292_v12, %v290_v9  ;;  %v313_v23 = vmul.f32 %v312_v17, %v310_v19 }
 0x31b   :  { %v300_v21 = vadd.f32 %v299_v15, %v293_v16 }
 0x31c   :  { %v303_v20 = vpop.permute.xlu1 %302 }
 0x31d   :  { %v306_v22 = vmul.f32 %v305_v18, %v303_v20 }
 0x31f   :  { %v307_v24 = vadd.f32 %v306_v22, %v300_v21 }
 0x321   :  { %v314_v25 = vadd.f32 %v313_v23, %v307_v24 }
 0x323   :  { %316 = vst.msk [vmem:[#allocation2] sm:$0xf] %vm315_vm5, %v314_v25 }
 0x324   :  { %327 = dma.vmem_to_hbm [thread:$0]  %s323_s10, 64, %s325_s13, [#allocation3]  }
 0x325   :  { %375 = dma.done.wait [#allocation3], 64  }
 0x326   :  { %376 = vsyncadd [#allocation3], 4294967232 }
 0x327   :  { %332 = vsyncpa [#allocation3], 1 }

</bundles_post_ra>
